<compile_context>
chip_gen: v5e
topology: v5e:2x2
jax: 0.10.0
libtpu: 0.0.40
codegen_flags: <defaults>
</compile_context>

<pallas_src>
import jax
import jax.numpy as jnp
from jax.experimental import pallas as pl
from jax.experimental.pallas import tpu as pltpu

NEG_SLOPE = 0.01  # nn.LeakyReLU default


def _leaky_relu(x):
    return jnp.where(x > 0, x, NEG_SLOPE * x)


def _round_up(v, m):
    return ((v + m - 1) // m) * m


def _mlp_kernel(x_ref, w1_ref, b1_ref, w2_ref, b2_ref, w3_ref, b3_ref, o_ref):
    # One batch tile: fused 3-layer MLP, all operands VMEM-resident.
    # bf16 operands feed the MXU; accumulation / bias / LeakyReLU stay f32.
    x = x_ref[...]
    h = jnp.dot(x, w1_ref[...], preferred_element_type=jnp.float32) + b1_ref[...]
    h = _leaky_relu(h).astype(w2_ref.dtype)
    h = jnp.dot(h, w2_ref[...], preferred_element_type=jnp.float32) + b2_ref[...]
    h = _leaky_relu(h).astype(w3_ref.dtype)
    y = jnp.dot(h, w3_ref[...], preferred_element_type=jnp.float32) + b3_ref[...]
    o_ref[...] = y.astype(o_ref.dtype)


def multi_agent_mlp_pallas(x, params, n_agents, n_agent_inputs, n_agent_outputs):
    """x: [..., n_agents, n_agent_inputs] -> [..., n_agents, n_agent_outputs]."""
    assert x.shape[-2:] == (n_agents, n_agent_inputs), (
        f"Last two dimensions must be ({n_agents}, {n_agent_inputs}), got {x.shape}"
    )
    w1, b1, w2, b2, w3, b3 = params
    lead = x.shape[:-2]
    b = 1
    for d in lead:
        b *= d
    out_dtype = x.dtype
    if b == 0:  # empty batch guard
        return jnp.zeros((*lead, n_agents, n_agent_outputs), out_dtype)

    din = n_agents * n_agent_inputs
    dh = w1.shape[1]
    dout = n_agents * n_agent_outputs
    out_isz = jnp.dtype(out_dtype).itemsize

    # share_params + centralised: flatten agent axis into the feature axis.
    # Stream activations and weights in bf16 (MXU-native, exact f32 products).
    x2d = x.reshape(b, din).astype(jnp.bfloat16)
    w1c = w1.astype(jnp.bfloat16)
    w2c = w2.astype(jnp.bfloat16)
    w3c = w3.astype(jnp.bfloat16)
    b1c = b1.astype(jnp.float32)
    b2c = b2.astype(jnp.float32)
    b3c = b3.astype(jnp.float32)

    # --- VMEM accounting ---------------------------------------------------
    # Resident weights/biases (x2 = default double-buffer reservation).
    w_vmem = 2 * (2 * (din * dh + dh * dh + dh * dout) + 4 * (2 * dh + dout))
    # Per-batch-row bytes: double-buffered bf16 input tile, double-buffered
    # output tile, plus f32/bf16 hidden intermediates and the f32 pre-store y.
    per_row = (2 * 2 * din          # x tile, bf16, 2 pipeline buffers
               + 2 * out_isz * dout  # out tile, 2 pipeline buffers
               + 2 * 6 * dh          # two hidden activations (f32 + bf16 copy)
               + 4 * dout)           # y in f32 before the final cast
    budget = 12 * 1024 * 1024        # safe even under v5e's 16 MiB scoped default
    tb_max = max(16, (budget - w_vmem) // per_row)
    tb_max = max(16, min(2048, (tb_max // 16) * 16))

    # --- Batch tiling: pick grid count first, then the tile size ------------
    g = pl.cdiv(b, tb_max)
    if b >= 32:
        g = max(g, 2)          # keep both v7x TensorCores busy
        if g % 2:
            g += 1             # balanced step count across the 2 TCs
    tb = _round_up(pl.cdiv(b, g), 16)   # bf16 sublane tile is (16, 128)
    b_pad = _round_up(b, tb)
    grid = (b_pad // tb,)

    if b_pad != b:
        x2d = jnp.pad(x2d, ((0, b_pad - b), (0, 0)))

    # Scoped-VMEM limit from the full accounting (+2x margin), capped below
    # v7x's 64 MiB physical VMEM.
    vmem_est = (2 * tb * din * 2 + 2 * tb * dout * out_isz
                + w_vmem + tb * (2 * 6 * dh + 4 * dout))
    vmem_limit = int(min(48 * 1024 * 1024, max(24 * 1024 * 1024, 2 * vmem_est)))

    # Cost estimate with real (unpadded) dims and real streamed byte counts.
    w_hbm = 2 * (din * dh + dh * dh + dh * dout) + 4 * (2 * dh + dout)
    cost = pl.CostEstimate(
        flops=2 * b * (din * dh + dh * dh + dh * dout),
        transcendentals=0,
        bytes_accessed=b * (2 * din + out_isz * dout) + w_hbm,
    )

    out2d = pl.pallas_call(
        _mlp_kernel,
        out_shape=jax.ShapeDtypeStruct((b_pad, dout), out_dtype),
        grid=grid,
        in_specs=[
            # Activation tile walks the batch axis (double-buffered stream).
            pl.BlockSpec((tb, din), lambda i: (i, 0)),
            # Weights / biases: same block every step -> VMEM-resident, no re-DMA.
            pl.BlockSpec((din, dh), lambda i: (0, 0)),
            pl.BlockSpec((1, dh), lambda i: (0, 0)),
            pl.BlockSpec((dh, dh), lambda i: (0, 0)),
            pl.BlockSpec((1, dh), lambda i: (0, 0)),
            pl.BlockSpec((dh, dout), lambda i: (0, 0)),
            pl.BlockSpec((1, dout), lambda i: (0, 0)),
        ],
        out_specs=pl.BlockSpec((tb, dout), lambda i: (i, 0)),
        compiler_params=pltpu.CompilerParams(
            dimension_semantics=("parallel",),   # shards grid across v7x's 2 TCs
            vmem_limit_bytes=vmem_limit,
        ),
        cost_estimate=cost,
    )(x2d, w1c, b1c, w2c, b2c, w3c, b3c)

    out2d = out2d[:b, :]
    return out2d.reshape(*lead, n_agents, n_agent_outputs)


def init_params(key, n_agents, n_agent_inputs, n_agent_outputs, num_cells=32):
    """Deterministic synthetic init (matches nn.Linear shapes, stored transposed)."""
    din = n_agents * n_agent_inputs
    dout = n_agents * n_agent_outputs
    ks = jax.random.split(key, 6)

    def lin(kw, kb, fan_in, fan_out):
        bound = 1.0 / jnp.sqrt(fan_in)
        w = jax.random.uniform(kw, (fan_in, fan_out), jnp.float32, -bound, bound)
        b = jax.random.uniform(kb, (1, fan_out), jnp.float32, -bound, bound)
        return w, b

    w1, b1 = lin(ks[0], ks[1], din, num_cells)
    w2, b2 = lin(ks[2], ks[3], num_cells, num_cells)
    w3, b3 = lin(ks[4], ks[5], num_cells, dout)
    return (w1, b1, w2, b2, w3, b3)


def reference_forward_f32(x, params, n_agents, n_agent_inputs, n_agent_outputs):
    """Pure f32 reference (highest precision)."""
    w1, b1, w2, b2, w3, b3 = params
    lead = x.shape[:-2]
    hp = jax.lax.Precision.HIGHEST
    x2d = x.reshape(*lead, n_agents * n_agent_inputs)
    h = _leaky_relu(jnp.dot(x2d, w1, precision=hp) + b1[0])
    h = _leaky_relu(jnp.dot(h, w2, precision=hp) + b2[0])
    y = jnp.dot(h, w3, precision=hp) + b3[0]
    return y.reshape(*lead, n_agents, n_agent_outputs)


def reference_forward_bf16(x, params, n_agents, n_agent_inputs, n_agent_outputs):
    """Matched-precision reference: bf16 operands, f32 accumulation (as in the kernel)."""
    def q(a):
        return a.astype(jnp.bfloat16).astype(jnp.float32)

    w1, b1, w2, b2, w3, b3 = params
    lead = x.shape[:-2]
    hp = jax.lax.Precision.HIGHEST
    x2d = q(x.reshape(*lead, n_agents * n_agent_inputs))
    h = _leaky_relu(jnp.dot(x2d, q(w1), precision=hp) + b1[0])
    h = _leaky_relu(jnp.dot(q(h), q(w2), precision=hp) + b2[0])
    y = jnp.dot(q(h), q(w3), precision=hp) + b3[0]
    return y.reshape(*lead, n_agents, n_agent_outputs)


if __name__ == "__main__":
    n_agents = 4
    n_agent_inputs = 8
    n_agent_outputs = 4
    num_cells = 32
    batch = 2

    key = jax.random.PRNGKey(0)
    kx, kp = jax.random.split(key)
    x = jax.random.normal(kx, (batch, n_agents, n_agent_inputs), jnp.float32)
    params = init_params(kp, n_agents, n_agent_inputs, n_agent_outputs, num_cells)

    out = multi_agent_mlp_pallas(x, params, n_agents, n_agent_inputs, n_agent_outputs)
    out = jax.block_until_ready(out)

    assert out.shape == (batch, n_agents, n_agent_outputs), out.shape

    ref_match = reference_forward_bf16(x, params, n_agents, n_agent_inputs, n_agent_outputs)
    ref_f32 = reference_forward_f32(x, params, n_agents, n_agent_inputs, n_agent_outputs)
    assert jnp.allclose(out, ref_match, atol=1e-4, rtol=1e-3), "mismatch vs matched-precision reference"
    assert jnp.allclose(out, ref_f32, atol=5e-2, rtol=5e-2), "mismatch vs f32 reference"

    print("KERNEL_OK")
</pallas_src>

<mosaic_0001>
module attributes {stable_mosaic.version = 11 : i64} {
  func.func @_mlp_kernel(%arg0: i32, %arg1: memref<16x32xbf16, #tpu.memory_space<vmem>>, %arg2: memref<32x32xbf16, #tpu.memory_space<vmem>>, %arg3: memref<1x32xf32, #tpu.memory_space<vmem>>, %arg4: memref<32x32xbf16, #tpu.memory_space<vmem>>, %arg5: memref<1x32xf32, #tpu.memory_space<vmem>>, %arg6: memref<32x16xbf16, #tpu.memory_space<vmem>>, %arg7: memref<1x16xf32, #tpu.memory_space<vmem>>, %arg8: memref<16x16xf32, #tpu.memory_space<vmem>>) attributes {dimension_semantics = [#tpu.dimension_semantics<parallel>], iteration_bounds = array<i64: 1>, scalar_prefetch = 0 : i64, scratch_operands = 0 : i64, tpu.core_type = #tpu.core_type<tc>, window_params = [{transform_indices = @transform_0, window_bounds = array<i64: 16, 32>}, {pipeline_mode = #tpu.pipeline_mode<synchronous>, transform_indices = @transform_1, window_bounds = array<i64: 32, 32>}, {pipeline_mode = #tpu.pipeline_mode<synchronous>, transform_indices = @transform_2, window_bounds = array<i64: 1, 32>}, {pipeline_mode = #tpu.pipeline_mode<synchronous>, transform_indices = @transform_3, window_bounds = array<i64: 32, 32>}, {pipeline_mode = #tpu.pipeline_mode<synchronous>, transform_indices = @transform_4, window_bounds = array<i64: 1, 32>}, {pipeline_mode = #tpu.pipeline_mode<synchronous>, transform_indices = @transform_5, window_bounds = array<i64: 32, 16>}, {pipeline_mode = #tpu.pipeline_mode<synchronous>, transform_indices = @transform_6, window_bounds = array<i64: 1, 16>}, {transform_indices = @transform_7, window_bounds = array<i64: 16, 16>}]} {
    %c0 = arith.constant 0 : index
    %c0_0 = arith.constant 0 : index
    %0 = vector.load %arg1[%c0, %c0_0] : memref<16x32xbf16, #tpu.memory_space<vmem>>, vector<16x32xbf16>
    %c0_1 = arith.constant 0 : index
    %c0_2 = arith.constant 0 : index
    %1 = vector.load %arg2[%c0_1, %c0_2] : memref<32x32xbf16, #tpu.memory_space<vmem>>, vector<32x32xbf16>
    %cst = arith.constant dense<0.000000e+00> : vector<16x32xf32>
    %2 = tpu.matmul %0, %1, %cst {dimension_numbers = #tpu.dot_dimension_numbers<[1], [0], [0], [1], [0, 0, 1, 1], [], []>} : vector<16x32xbf16>, vector<32x32xbf16>, vector<16x32xf32> -> vector<16x32xf32>
    %c0_3 = arith.constant 0 : index
    %c0_4 = arith.constant 0 : index
    %3 = vector.load %arg3[%c0_3, %c0_4] : memref<1x32xf32, #tpu.memory_space<vmem>>, vector<1x32xf32>
    %4 = vector.broadcast %3 : vector<1x32xf32> to vector<16x32xf32>
    %5 = arith.addf %2, %4 : vector<16x32xf32>
    %cst_5 = arith.constant 0.000000e+00 : f32
    %6 = vector.broadcast %cst_5 : f32 to vector<16x32xf32>
    %7 = arith.cmpf ogt, %5, %6 : vector<16x32xf32>
    %cst_6 = arith.constant 0.00999999977 : f32
    %8 = vector.broadcast %cst_6 : f32 to vector<16x32xf32>
    %9 = arith.mulf %8, %5 : vector<16x32xf32>
    %10 = arith.select %7, %5, %9 : vector<16x32xi1>, vector<16x32xf32>
    %11 = arith.truncf %10 : vector<16x32xf32> to vector<16x32xbf16>
    %c0_7 = arith.constant 0 : index
    %c0_8 = arith.constant 0 : index
    %12 = vector.load %arg4[%c0_7, %c0_8] : memref<32x32xbf16, #tpu.memory_space<vmem>>, vector<32x32xbf16>
    %cst_9 = arith.constant dense<0.000000e+00> : vector<16x32xf32>
    %13 = tpu.matmul %11, %12, %cst_9 {dimension_numbers = #tpu.dot_dimension_numbers<[1], [0], [0], [1], [0, 0, 1, 1], [], []>} : vector<16x32xbf16>, vector<32x32xbf16>, vector<16x32xf32> -> vector<16x32xf32>
    %c0_10 = arith.constant 0 : index
    %c0_11 = arith.constant 0 : index
    %14 = vector.load %arg5[%c0_10, %c0_11] : memref<1x32xf32, #tpu.memory_space<vmem>>, vector<1x32xf32>
    %15 = vector.broadcast %14 : vector<1x32xf32> to vector<16x32xf32>
    %16 = arith.addf %13, %15 : vector<16x32xf32>
    %cst_12 = arith.constant 0.000000e+00 : f32
    %17 = vector.broadcast %cst_12 : f32 to vector<16x32xf32>
    %18 = arith.cmpf ogt, %16, %17 : vector<16x32xf32>
    %cst_13 = arith.constant 0.00999999977 : f32
    %19 = vector.broadcast %cst_13 : f32 to vector<16x32xf32>
    %20 = arith.mulf %19, %16 : vector<16x32xf32>
    %21 = arith.select %18, %16, %20 : vector<16x32xi1>, vector<16x32xf32>
    %22 = arith.truncf %21 : vector<16x32xf32> to vector<16x32xbf16>
    %c0_14 = arith.constant 0 : index
    %c0_15 = arith.constant 0 : index
    %23 = vector.load %arg6[%c0_14, %c0_15] : memref<32x16xbf16, #tpu.memory_space<vmem>>, vector<32x16xbf16>
    %cst_16 = arith.constant dense<0.000000e+00> : vector<16x16xf32>
    %24 = tpu.matmul %22, %23, %cst_16 {dimension_numbers = #tpu.dot_dimension_numbers<[1], [0], [0], [1], [0, 0, 1, 1], [], []>} : vector<16x32xbf16>, vector<32x16xbf16>, vector<16x16xf32> -> vector<16x16xf32>
    %c0_17 = arith.constant 0 : index
    %c0_18 = arith.constant 0 : index
    %25 = vector.load %arg7[%c0_17, %c0_18] : memref<1x16xf32, #tpu.memory_space<vmem>>, vector<1x16xf32>
    %26 = vector.broadcast %25 : vector<1x16xf32> to vector<16x16xf32>
    %27 = arith.addf %24, %26 : vector<16x16xf32>
    %c0_19 = arith.constant 0 : index
    %c0_20 = arith.constant 0 : index
    %28 = vector.load %arg8[%c0_19, %c0_20] : memref<16x16xf32, #tpu.memory_space<vmem>>, vector<16x16xf32>
    tpu.vector_store %arg8[%c0_19, %c0_20], %27 {strides = array<i32>} : memref<16x16xf32, #tpu.memory_space<vmem>>, vector<16x16xf32>,
    return
  }
  func.func @transform_0(%arg0: i32) -> (i32, i32) {
    %c0_i32 = arith.constant 0 : i32
    %c0_i32_0 = arith.constant 0 : i32
    return %arg0, %c0_i32 : i32, i32
  }
  func.func @transform_1(%arg0: i32) -> (i32, i32) {
    %c0_i32 = arith.constant 0 : i32
    %c0_i32_0 = arith.constant 0 : i32
    %c0_i32_1 = arith.constant 0 : i32
    return %c0_i32, %c0_i32_0 : i32, i32
  }
  func.func @transform_2(%arg0: i32) -> (i32, i32) {
    %c0_i32 = arith.constant 0 : i32
    %c0_i32_0 = arith.constant 0 : i32
    %c0_i32_1 = arith.constant 0 : i32
    return %c0_i32, %c0_i32_0 : i32, i32
  }
  func.func @transform_3(%arg0: i32) -> (i32, i32) {
    %c0_i32 = arith.constant 0 : i32
    %c0_i32_0 = arith.constant 0 : i32
    %c0_i32_1 = arith.constant 0 : i32
    return %c0_i32, %c0_i32_0 : i32, i32
  }
  func.func @transform_4(%arg0: i32) -> (i32, i32) {
    %c0_i32 = arith.constant 0 : i32
    %c0_i32_0 = arith.constant 0 : i32
    %c0_i32_1 = arith.constant 0 : i32
    return %c0_i32, %c0_i32_0 : i32, i32
  }
  func.func @transform_5(%arg0: i32) -> (i32, i32) {
    %c0_i32 = arith.constant 0 : i32
    %c0_i32_0 = arith.constant 0 : i32
    %c0_i32_1 = arith.constant 0 : i32
    return %c0_i32, %c0_i32_0 : i32, i32
  }
  func.func @transform_6(%arg0: i32) -> (i32, i32) {
    %c0_i32 = arith.constant 0 : i32
    %c0_i32_0 = arith.constant 0 : i32
    %c0_i32_1 = arith.constant 0 : i32
    return %c0_i32, %c0_i32_0 : i32, i32
  }
  func.func @transform_7(%arg0: i32) -> (i32, i32) {
    %c0_i32 = arith.constant 0 : i32
    %c0_i32_0 = arith.constant 0 : i32
    return %arg0, %c0_i32 : i32, i32
  }
}

</mosaic_0001>

<bundles_post_ra>
// kernel: tpu_custom_call.1
= control target key start
LH: loop header
LB: loop body
LE: loop exit
PB: predicated region body
PF: predicated region fallthrough
CT: control target
= control target key end

     0   :  { %12 = vsyncpa [#allocation3], 0  ;;  %s377_s0 = inlined_call_operand.vmem [shape: bf16[16,32], index: 0, kind: input, shape index: {}]   ;;  %s378_s1 = inlined_call_operand.vmem [shape: bf16[32,32], index: 1, kind: input, shape index: {}]   ;;  %s379_s2 = inlined_call_operand.vmem [shape: f32[1,32], index: 2, kind: input, shape index: {}]   ;;  %s380_s3 = inlined_call_operand.hbm [shape: bf16[32,32], index: 3, kind: input, shape index: {}]   ;;  %s381_s4 = inlined_call_operand.vmem [shape: f32[1,32], index: 4, kind: input, shape index: {}]   ;;  %s382_s5 = inlined_call_operand.vmem [shape: bf16[32,16], index: 5, kind: input, shape index: {}]   ;;  %s383_s6 = inlined_call_operand.vmem [shape: f32[1,16], index: 6, kind: input, shape index: {}]   ;;  %s384_s7 = inlined_call_operand.hbm [shape: f32[16,16], index: 7, kind: output, shape index: {}]  }
   0x1   :  { %13 = vsyncpa [#allocation4], 0  ;;  %s24_s26 = sshll.u32 %s380_s3, 4  ;;  %s298_s27 = smov [#allocation2]   ;;  %s25_s26 = int_to_ptr.hbm [resolvable:$true] %s24_s26 }
   0x2   :  { %s26_s28 = sshll.u32 %s298_s27, 4  ;;  %s299_s29 = smov 64   ;;  %s27_s28 = int_to_ptr.vmem [resolvable:$true] %s26_s28 }
   0x3   :  { %s300_s30 = smov 4  }
   0x4   :  { %32 = dma.hbm_to_vmem [thread:$0]  %s25_s26, 256, %s27_s28, [#allocation3], %s299_s29, %s299_s29, %s300_s30  }
   0x5   :  { %294 = dma.done.wait [#allocation3], 256  }
   0x6   :  { %295 = vsyncadd [#allocation3], 4294967040  ;;  %v232_v0 = vld [vmem:[%s378_s1 + $0x8] sm:$0xff]  ;;  %v231_v1 = vld [vmem:[%s378_s1] sm:$0xff]  ;;  %vm71_vm0 = vcmask 261120   ;;  %vm177_vm5 = vcmask 130048  }
   0x7   :  { %81 = vmatpush.bf16.msra.mxu0 %v232_v0  ;;  %v230_v2 = vld [vmem:[%s377_s0] sm:$0xff]  ;;  %v234_v3 = vld [vmem:[#allocation2 + $0x8] sm:$0xff]  ;;  %s186_s22 = sshll.u32 %s384_s7, 4  ;;  %s302_s23 = smov 128   ;;  %s187_s22 = int_to_ptr.hbm [resolvable:$true] %s186_s22 }
   0x8   :  { %125 = vmatpush.bf16.msra.mxu1 %v234_v3  ;;  %v233_v4 = vld [vmem:[#allocation2] sm:$0xff]  ;;  %v236_v15 = vld [vmem:[%s382_s5 + $0x8] sm:$0xff]  ;;  %s303_s24 = smov 8  }
   0x9   :  { %v243_v6 = vld [vmem:[%s379_s2] ss:$0 sm:$0xff]  ;;  %169 = vmatpush.bf16.msra.mxu2 %v236_v15 }
   0xa   :  { %v235_v16 = vld [vmem:[%s382_s5] sm:$0xff] }
   0xb   :  { %82 = vmatpush.bf16.msra.mxu0 %v231_v1  ;;  %v244_v18 = vld [vmem:[%s381_s4] ss:$0 sm:$0xff]  ;;  %s301_s4 = smov [#allocation5]  }
   0xc   :  { %126 = vmatpush.bf16.msra.mxu1 %v233_v4  ;;  %v245_v27 = vld [vmem:[%s383_s6] ss:$0 sm:$0xff]  ;;  %s184_s19 = sshll.u32 %s301_s4, 4  ;;  %s185_s19 = int_to_ptr.vmem [resolvable:$true] %s184_s19 }
   0xd   :  { %170 = vmatpush.bf16.msra.mxu2 %v235_v16 }
   0xe   :  { %211 = vmatmul.msk.bf16.vlgmr.msra.gmra.mxu0 %vm71_vm0, %v230_v2 }
  0x8b   :  { %v84_v5 = vpop.f32.mrf.mxu0 }
  0x8c   :  { %v85_v7 = vadd.f32 %v243_v6, %v84_v5 }
  0x8e   :  { %v91_v9 = vmul.f32 0.01, %v85_v7  ;;  %vm89_vm1 = vcmp.gt.f32.partialorder %v85_v7, 0.0 }
  0x90   :  { %v93_v12 = vsel %vm89_vm1, %v85_v7, %v91_v9 }
  0x93   :  { %v86_v8 = vpop.f32.mrf.mxu0 }
  0x94   :  { %v87_v10 = vadd.f32 %v243_v6, %v86_v8 }
  0x96   :  { %vm90_vm2 = vcmp.gt.f32.partialorder %v87_v10, 0.0  ;;  %v92_v11 = vmul.f32 0.01, %v87_v10 }
  0x98   :  { %v94_v13 = vsel %vm90_vm2, %v87_v10, %v92_v11 }
  0x99   :  { %v95_v14 = vpack.c.bf16 %v94_v13, %v93_v12 }
  0x9b   :  { %220 = vmatmul.msk.bf16.vlgmr.msra.gmra.mxu1 %vm71_vm0, %v95_v14 }
 0x118   :  { %v128_v17 = vpop.f32.mrf.mxu1 }
 0x119   :  { %v129_v19 = vadd.f32 %v244_v18, %v128_v17 }
 0x11b   :  { %v135_v21 = vmul.f32 0.01, %v129_v19  ;;  %vm133_vm3 = vcmp.gt.f32.partialorder %v129_v19, 0.0 }
 0x11d   :  { %v137_v24 = vsel %vm133_vm3, %v129_v19, %v135_v21 }
 0x120   :  { %v130_v20 = vpop.f32.mrf.mxu1 }
 0x121   :  { %v131_v22 = vadd.f32 %v244_v18, %v130_v20 }
 0x123   :  { %vm134_vm4 = vcmp.gt.f32.partialorder %v131_v22, 0.0  ;;  %v136_v23 = vmul.f32 0.01, %v131_v22 }
 0x125   :  { %v138_v25 = vsel %vm134_vm4, %v131_v22, %v136_v23 }
 0x126   :  { %v139_v26 = vpack.c.bf16 %v138_v25, %v137_v24 }
 0x128   :  { %229 = vmatmul.msk.bf16.vlgmr.msra.gmra.mxu2 %vm71_vm0, %v139_v26 }
 0x1ab   :  { %v172_v28 = vpop.f32.mrf.mxu2 }
 0x1ac   :  { %v173_v29 = vadd.f32 %v245_v27, %v172_v28 }
 0x1ae   :  { %178 = vst.msk [vmem:[#allocation5] sm:$0xff] %vm177_vm5, %v173_v29 }
 0x1b3   :  { %v174_v30 = vpop.f32.mrf.mxu2 }
 0x1b4   :  { %v175_v31 = vadd.f32 %v245_v27, %v174_v30 }
 0x1b6   :  { %179 = vst.msk [vmem:[#allocation5 + $0x8] sm:$0xff] %vm177_vm5, %v175_v31 }
 0x1b7   :  { %192 = dma.vmem_to_hbm [thread:$0]  %s185_s19, 256, %s187_s22, [#allocation4], %s302_s23, %s302_s23, %s303_s24  }
 0x1b8   :  { %296 = dma.done.wait [#allocation4], 256  }
 0x1b9   :  { %297 = vsyncadd [#allocation4], 4294967040 }
 0x1ba   :  { %197 = vsyncpa [#allocation3], 1 }
 0x1bb   :  { %198 = vsyncpa [#allocation4], 1 }

</bundles_post_ra>
